<compile_context>
chip_gen: v6e
topology: v6e:2x2x1
jax: 0.10.0
libtpu: 0.0.40
codegen_flags: <defaults>
</compile_context>

<pallas_src>
import math

import jax
import jax.numpy as jnp
from jax import lax
from jax.experimental import pallas as pl
from jax.experimental.pallas import tpu as pltpu

_ALPHA = 0.25          # gamma == 2 is hardcoded in the reference -> implemented as a square
_SLAB_ELEMS = 4096     # one inner-loop slab = SUB * LANES elements = 4 f32 vregs


def _cdiv(a, b):
    return -(-a // b)


def _pick_target_block_bytes():
    """Per-input DMA block target, sized per TPU generation."""
    try:
        vmem_bytes = pltpu.get_tpu_info().vmem_capacity_bytes
    except Exception:
        vmem_bytes = 128 * 1024 * 1024
    if vmem_bytes <= 64 * 1024 * 1024:
        # v7x-class: only 64 MiB VMEM/TC but ~3.2 TB/s HBM -> bigger blocks to
        # amortize the ~0.35us/step overhead (2 inputs x 2 bufs x 6 MiB = 24 MiB).
        return 6 * 1024 * 1024
    # v5e/v6e (128 MiB VMEM): 4 MiB/input keeps the pipeline around 16 MiB.
    return 4 * 1024 * 1024


def _make_kernel(g, kbp, srows, needs_guard, unroll):
    """Kernel over one (g, SUB, LANES) chunk of one sample, accumulating into out_ref."""

    def kernel(x_ref, t_ref, out_ref):
        k = pl.program_id(2)
        chunk = pl.program_id(1) * kbp + k        # logical (unclamped) chunk id
        row0 = chunk * g                          # first slab-row of this chunk

        def body(j, acc):
            x = x_ref[j].astype(jnp.float32)      # (SUB, LANES) slab, native->f32 in-kernel
            t = t_ref[j].astype(jnp.float32)
            # pt = x*t + (1-x)*(1-t) = 1 - (x + t - 2*x*t); keep (1-pt) directly.
            xt = x * t
            one_m_pt = (x + t) - (xt + xt)
            pt = 1.0 - one_m_pt
            logpt = jnp.log(pt)                                # EUP slot (no eps clamp, as in ref)
            neg_at = -_ALPHA - (1.0 - 2.0 * _ALPHA) * t        # = -at, leading minus folded
            term = (one_m_pt * one_m_pt) * (logpt * neg_at)    # gamma == 2
            if needs_guard:
                # Ragged / overflow chunk: rows past srows hold garbage -> drop them
                # with a select (multiplying by a 0/1 mask would propagate NaN).
                term = jnp.where(row0 + j < srows, term, 0.0)
            return acc + term

        acc = lax.fori_loop(0, g, body, jnp.zeros(out_ref.shape, jnp.float32),
                            unroll=unroll)

        # Single out_ref touch per grid step.
        @pl.when(k == 0)
        def _():
            out_ref[...] = acc

        @pl.when(k != 0)
        def _():
            out_ref[...] += acc

    return kernel


def focal_loss_batchproof(inputs, targets, *, target_block_bytes=None):
    """JAX/Pallas equivalent of FocalLoss_batchproof.forward(inputs, targets)."""
    assert inputs.shape == targets.shape, (inputs.shape, targets.shape)
    n = inputs.shape[0]
    d = math.prod(inputs.shape[1:])

    isx = jnp.dtype(inputs.dtype).itemsize
    ist = jnp.dtype(targets.dtype).itemsize
    # Dtype-dependent sublane packing (8 for 4-byte, 16 for bf16, 32 for int8/bool)
    # so the narrowest input still fills whole packed vregs; SUB * LANES == 4096.
    sub = max(8, 32 // min(isx, ist))
    lanes = _SLAB_ELEMS // sub

    x = inputs.reshape(n, d)       # free (contiguous) reshape; f32 cast happens in-kernel
    t = targets.reshape(n, d)

    srows = _cdiv(d, _SLAB_ELEMS)
    d_pad = srows * _SLAB_ELEMS
    if d_pad != d:
        # Minimal pad (< 4096 elements/sample) only when C*D*H*W is not a multiple
        # of 4096; zero padding contributes exactly 0 to the focal sum (pt == 1).
        x = jnp.pad(x, ((0, 0), (0, d_pad - d)))
        t = jnp.pad(t, ((0, 0), (0, d_pad - d)))
    x = x.reshape(n, srows, sub, lanes)
    t = t.reshape(n, srows, sub, lanes)

    # --- chunking: g slabs per grid step, 2-way core split over chunks ----------
    if target_block_bytes is None:
        target_block_bytes = _pick_target_block_bytes()
    g_max = max(1, target_block_bytes // (_SLAB_ELEMS * max(isx, ist)))
    kb0 = _cdiv(srows, g_max)          # minimum number of chunks
    cs = 2 if kb0 >= 2 else 1          # core-split axis (keeps v7x megacore busy at small N)
    kbp = _cdiv(kb0, cs)               # sequential chunks per (sample, split)
    g = _cdiv(srows, cs * kbp)         # rebalanced slabs per chunk (<= g_max, minimal waste)
    kb = _cdiv(srows, g)               # actual number of blocks along the srows axis
    needs_guard = srows != cs * kbp * g
    needs_clamp = cs * kbp > kb        # overflow chunks exist -> clamp their block index

    if needs_clamp:
        def in_map(i, c, k):
            return (i, jnp.minimum(c * kbp + k, kb - 1), 0, 0)
    else:
        def in_map(i, c, k):
            return (i, c * kbp + k, 0, 0)

    def out_map(i, c, k):
        return (i, c, 0, 0)

    bx = g * _SLAB_ELEMS * isx         # per-step block bytes, input x
    bt = g * _SLAB_ELEMS * ist         # per-step block bytes, input t
    vmem_limit = min(2 * (bx + bt) + (16 << 20), 56 << 20)

    kernel = _make_kernel(g, kbp, srows, needs_guard, unroll=2 if g >= 2 else 1)

    partials = pl.pallas_call(
        kernel,
        out_shape=jax.ShapeDtypeStruct((n, cs, sub, lanes), jnp.float32),
        grid=(n, cs, kbp),
        in_specs=[
            pl.BlockSpec((None, g, sub, lanes), in_map),
            pl.BlockSpec((None, g, sub, lanes), in_map),
        ],
        out_specs=pl.BlockSpec((None, None, sub, lanes), out_map),
        compiler_params=pltpu.CompilerParams(
            dimension_semantics=("parallel", "parallel", "arbitrary"),
            vmem_limit_bytes=int(vmem_limit),
        ),
        cost_estimate=pl.CostEstimate(
            flops=11 * n * d_pad,
            transcendentals=n * d_pad,
            bytes_accessed=n * d_pad * (isx + ist) + n * cs * _SLAB_ELEMS * 4,
        ),
    )(x, t)

    # Tiny (N, CS, SUB, LANES) partial-sum tensor: finish the reduction in XLA,
    # preserving the reference's per-sample-mean -> batch-mean order.
    per_sample_sum = jnp.sum(partials, axis=(1, 2, 3))          # (N,)
    return jnp.sum(per_sample_sum / jnp.float32(d)) / jnp.float32(n)


def _reference_focal(inputs, targets, gamma=2.0, alpha=0.25):
    n = inputs.shape[0]
    p = inputs.reshape(n, -1).astype(jnp.float32)
    t = targets.reshape(n, -1).astype(jnp.float32)
    pt = p * t + (1.0 - p) * (1.0 - t)
    logpt = jnp.log(pt)
    at = (1.0 - alpha) * t + alpha * (1.0 - t)
    loss = -((1.0 - pt) ** gamma) * (logpt * at)
    return jnp.sum(jnp.mean(loss, axis=1)) / n


if __name__ == "__main__":
    keys = jax.random.split(jax.random.PRNGKey(0), 6)

    def _check(probs, masks, **kw):
        out = jax.block_until_ready(focal_loss_batchproof(probs, masks, **kw))
        ref = _reference_focal(probs, masks)
        assert jnp.allclose(out, ref, rtol=1e-5, atol=1e-5), (out, ref)

    # Case 1: 5-D NCDHW f32 probs / f32 masks, C*D*H*W = 3072 (not a multiple of
    # 4096) -> exercises the minimal zero-pad path.
    n, c, dz, h, w = 2, 3, 4, 16, 16
    probs = jax.nn.sigmoid(jax.random.normal(keys[0], (n, c, dz, h, w), jnp.float32))
    masks = (jax.random.uniform(keys[1], (n, c, dz, h, w)) > 0.5).astype(jnp.float32)
    _check(probs, masks)

    # Case 2: bf16 probs + int8 masks (dtype-dependent sublane packing, SUB=32 /
    # LANES=128), C*D*H*W = 16384 (multiple of 4096) -> zero-copy fast path.
    shape2 = (1, 4, 8, 16, 32)
    p2 = jnp.clip(jax.nn.sigmoid(jax.random.normal(keys[2], shape2, jnp.float32)),
                  0.05, 0.95).astype(jnp.bfloat16)
    m2 = (jax.random.uniform(keys[3], shape2) > 0.5).astype(jnp.int8)
    _check(p2, m2)

    # Case 3: forced tiny blocks -> multi-chunk grid with the 2-way core split,
    # a ragged last chunk, and a clamped overflow chunk all exercised.
    shape3 = (2, 1, 9, 64, 64)   # C*D*H*W = 36864 = 9 * 4096
    p3 = jax.nn.sigmoid(jax.random.normal(keys[4], shape3, jnp.float32))
    m3 = (jax.random.uniform(keys[5], shape3) > 0.5).astype(jnp.float32)
    _check(p3, m3, target_block_bytes=64 * 1024)

    print("KERNEL_OK")
</pallas_src>

<mosaic_0001>
module attributes {stable_mosaic.version = 11 : i64} {
  func.func @kernel(%arg0: i32, %arg1: i32, %arg2: i32, %arg3: memref<1x1x8x512xf32, #tpu.memory_space<vmem>>, %arg4: memref<1x1x8x512xf32, #tpu.memory_space<vmem>>, %arg5: memref<1x1x8x512xf32, #tpu.memory_space<vmem>>) attributes {dimension_semantics = [#tpu.dimension_semantics<parallel>, #tpu.dimension_semantics<parallel>, #tpu.dimension_semantics<arbitrary>], iteration_bounds = array<i64: 2, 1, 1>, scalar_prefetch = 0 : i64, scratch_operands = 0 : i64, tpu.core_type = #tpu.core_type<tc>, window_params = [{transform_indices = @transform_0, window_bounds = array<i64: 1, 1, 8, 512>}, {transform_indices = @transform_1, window_bounds = array<i64: 1, 1, 8, 512>}, {transform_indices = @transform_2, window_bounds = array<i64: 1, 1, 8, 512>}]} {
    %cst = arith.constant 0.000000e+00 : f32
    %0 = vector.broadcast %cst : f32 to vector<8x512xf32>
    %c0_i32 = arith.constant 0 : i32
    %c0 = arith.constant 0 : index
    %1 = arith.index_cast %c0_i32 : i32 to index
    %c0_0 = arith.constant 0 : index
    %c0_1 = arith.constant 0 : index
    %2 = vector.load %arg3[%c0, %1, %c0_0, %c0_1] : memref<1x1x8x512xf32, #tpu.memory_space<vmem>>, vector<1x1x8x512xf32>
    %3 = vector.shape_cast %2 : vector<1x1x8x512xf32> to vector<8x512xf32>
    %c0_2 = arith.constant 0 : index
    %4 = arith.index_cast %c0_i32 : i32 to index
    %c0_3 = arith.constant 0 : index
    %c0_4 = arith.constant 0 : index
    %5 = vector.load %arg4[%c0_2, %4, %c0_3, %c0_4] : memref<1x1x8x512xf32, #tpu.memory_space<vmem>>, vector<1x1x8x512xf32>
    %6 = vector.shape_cast %5 : vector<1x1x8x512xf32> to vector<8x512xf32>
    %7 = arith.mulf %3, %6 : vector<8x512xf32>
    %8 = arith.addf %3, %6 : vector<8x512xf32>
    %9 = arith.addf %7, %7 : vector<8x512xf32>
    %10 = arith.subf %8, %9 : vector<8x512xf32>
    %cst_5 = arith.constant 1.000000e+00 : f32
    %11 = vector.broadcast %cst_5 : f32 to vector<8x512xf32>
    %12 = arith.subf %11, %10 : vector<8x512xf32>
    %13 = math.log %12 : vector<8x512xf32>
    %cst_6 = arith.constant 5.000000e-01 : f32
    %14 = vector.broadcast %cst_6 : f32 to vector<8x512xf32>
    %15 = arith.mulf %14, %6 : vector<8x512xf32>
    %cst_7 = arith.constant -2.500000e-01 : f32
    %16 = vector.broadcast %cst_7 : f32 to vector<8x512xf32>
    %17 = arith.subf %16, %15 : vector<8x512xf32>
    %18 = arith.mulf %10, %10 : vector<8x512xf32>
    %19 = arith.mulf %13, %17 : vector<8x512xf32>
    %20 = arith.mulf %18, %19 : vector<8x512xf32>
    %21 = arith.addf %0, %20 : vector<8x512xf32>
    %c1_i32 = arith.constant 1 : i32
    %c0_i32_8 = arith.constant 0 : i32
    %22 = arith.cmpi eq, %arg2, %c0_i32_8 : i32
    %23 = arith.extui %22 : i1 to i32
    %c0_i32_9 = arith.constant 0 : i32
    %24 = arith.cmpi ne, %23, %c0_i32_9 : i32
    scf.if %24 {
      %c0_12 = arith.constant 0 : index
      %c0_13 = arith.constant 0 : index
      %c0_14 = arith.constant 0 : index
      %c0_15 = arith.constant 0 : index
      %28 = vector.load %arg5[%c0_12, %c0_13, %c0_14, %c0_15] : memref<1x1x8x512xf32, #tpu.memory_space<vmem>>, vector<1x1x8x512xf32>
      %29 = vector.shape_cast %28 : vector<1x1x8x512xf32> to vector<8x512xf32>
      %30 = vector.shape_cast %21 : vector<8x512xf32> to vector<1x1x8x512xf32>
      tpu.vector_store %arg5[%c0_12, %c0_13, %c0_14, %c0_15], %30 {strides = array<i32>} : memref<1x1x8x512xf32, #tpu.memory_space<vmem>>, vector<1x1x8x512xf32>,
    } else {
    }
    %c0_i32_10 = arith.constant 0 : i32
    %25 = arith.cmpi ne, %arg2, %c0_i32_10 : i32
    %26 = arith.extui %25 : i1 to i32
    %c0_i32_11 = arith.constant 0 : i32
    %27 = arith.cmpi ne, %26, %c0_i32_11 : i32
    scf.if %27 {
      %c0_12 = arith.constant 0 : index
      %c0_13 = arith.constant 0 : index
      %c0_14 = arith.constant 0 : index
      %c0_15 = arith.constant 0 : index
      %28 = vector.load %arg5[%c0_12, %c0_13, %c0_14, %c0_15] : memref<1x1x8x512xf32, #tpu.memory_space<vmem>>, vector<1x1x8x512xf32>
      %29 = vector.shape_cast %28 : vector<1x1x8x512xf32> to vector<8x512xf32>
      %30 = arith.addf %29, %21 : vector<8x512xf32>
      %c0_16 = arith.constant 0 : index
      %c0_17 = arith.constant 0 : index
      %c0_18 = arith.constant 0 : index
      %c0_19 = arith.constant 0 : index
      %31 = vector.load %arg5[%c0_16, %c0_17, %c0_18, %c0_19] : memref<1x1x8x512xf32, #tpu.memory_space<vmem>>, vector<1x1x8x512xf32>
      %32 = vector.shape_cast %31 : vector<1x1x8x512xf32> to vector<8x512xf32>
      %33 = vector.shape_cast %30 : vector<8x512xf32> to vector<1x1x8x512xf32>
      tpu.vector_store %arg5[%c0_16, %c0_17, %c0_18, %c0_19], %33 {strides = array<i32>} : memref<1x1x8x512xf32, #tpu.memory_space<vmem>>, vector<1x1x8x512xf32>,
    } else {
    }
    return
  }
  func.func @transform_0(%arg0: i32, %arg1: i32, %arg2: i32) -> (i32, i32, i32, i32) {
    %c1_i32 = arith.constant 1 : i32
    %0 = arith.muli %arg1, %c1_i32 : i32
    %1 = arith.addi %0, %arg2 : i32
    %c0_i32 = arith.constant 0 : i32
    %c0_i32_0 = arith.constant 0 : i32
    %c0_i32_1 = arith.constant 0 : i32
    return %arg0, %1, %c0_i32, %c0_i32_0 : i32, i32, i32, i32
  }
  func.func @transform_1(%arg0: i32, %arg1: i32, %arg2: i32) -> (i32, i32, i32, i32) {
    %c1_i32 = arith.constant 1 : i32
    %0 = arith.muli %arg1, %c1_i32 : i32
    %1 = arith.addi %0, %arg2 : i32
    %c0_i32 = arith.constant 0 : i32
    %c0_i32_0 = arith.constant 0 : i32
    %c0_i32_1 = arith.constant 0 : i32
    return %arg0, %1, %c0_i32, %c0_i32_0 : i32, i32, i32, i32
  }
  func.func @transform_2(%arg0: i32, %arg1: i32, %arg2: i32) -> (i32, i32, i32, i32) {
    %c0_i32 = arith.constant 0 : i32
    %c0_i32_0 = arith.constant 0 : i32
    %c0_i32_1 = arith.constant 0 : i32
    return %arg0, %arg1, %c0_i32, %c0_i32_0 : i32, i32, i32, i32
  }
}

</mosaic_0001>

<bundles_post_ra>
// kernel: tpu_custom_call.1
= control target key start
LH: loop header
LB: loop body
LE: loop exit
PB: predicated region body
PF: predicated region fallthrough
CT: control target
= control target key end

     0   :  { %7 = vsyncpa [#allocation3], 0  ;;  %s880_s0 = inlined_call_operand.hbm [shape: f32[2,1,8,512], index: 0, kind: input, shape index: {}]   ;;  %s881_s1 = inlined_call_operand.hbm [shape: f32[2,1,8,512], index: 1, kind: input, shape index: {}]   ;;  %s882_s2 = inlined_call_operand.hbm [shape: f32[2,1,8,512], index: 2, kind: output, shape index: {}]  }
   0x1   :  { %9 = vsyncpa [#allocation3 + $0x1], 0 }
   0x2   :  { %10 = vsyncpa [#allocation6], 0 }
   0x3   :  { %12 = vsyncpa [#allocation6 + $0x1], 0 }
   0x4   :  { %13 = vsyncpa [#allocation4], 0 }
   0x5   :  { %15 = vsyncpa [#allocation4 + $0x1], 0  ;;  %s708_s9 = smov 0   ;;  %s710_s10 = smov 0  }
   0x6   :  { %s712_s11 = smov 0   ;;  %s714_s12 = smov 0  }
   0x7   :  { %s716_s13 = smov 0   ;;  %s718_s14 = smov 0  }
   0x8 LB: > { %s451_s15 = sadd.s32 4294967295, %s688_s14   ;;  %s452_s16 = sadd.s32 4294967294, %s688_s14   ;;  %s688_s14 = sphi %s718_s14, %s21_s14   ;;  %s684_s13 = sphi %s716_s13, %s894_s13   ;;  %s680_s12 = sphi %s714_s12, %s893_s12   ;;  %s676_s11 = sphi %s712_s11, %s892_s11   ;;  %s672_s10 = sphi %s710_s10, %s891_s10   ;;  %s668_s9 = sphi %s708_s9, %s890_s9  }
   0x9   : > { %s40_s17 = sadd.s32 1, %s684_s13  ;;  %s51_s18 = sadd.s32 1, %s676_s11 }
   0xa   : > { %p42_p0 = scmp.ge.s32.totalorder %s40_s17, 2  ;;  %p58_p1 = scmp.ne.s32.totalorder %s676_s11, %s672_s10 }
   0xb   : > { %p59_p2 = scmp.eq.s32.totalorder %s688_s14, 0  ;;  %p64_p3 = scmp.ne.s32.totalorder %s672_s10, %s668_s9 }
   0xc   : > { %s896_s17 = smov (%p42_p0, %s40_s17), 0  ;;  %p65_p5 = scmp.eq.s32.totalorder %s451_s15, 0 }
   0xd   : > { %p749_p4 = por %p59_p2, %p58_p1  ;;  %s46_s20 = ssub.s32 %s684_s13, %s896_s17 }
   0xe   : > { %p120_p6 = scmp.eq.s32.totalorder %s451_s15, 1  ;;  %p49_p7 = scmp.eq.s32.totalorder %s46_s20, 0 }
   0xf   : > { %p755_p8 = por %p65_p5, %p64_p3  ;;  %p126_p10 = scmp.eq.s32.totalorder %s452_s16, 1 }
  0x10   : > { %p759_p9 = por %p120_p6, %p58_p1  ;;  %p490_p13 = scmp.lt.s32.totalorder %s688_s14, 2 }
  0x11   : > { %s764_s23 = scalar_select %p49_p7, %s676_s11, %s51_s18  }
  0x12   : > { %p766_p11 = por %p126_p10, %p64_p3  ;;  %s773_s25 = sand.u32 1, %s676_s11  }
  0x13   : > { %s455_s26 = sshll.u32 %s773_s25, 5  ;;  %s470_s27 = sshll.u32 %s684_s13, 9 }
  0x14   : > { %s159_s30 = scalar_lea.hbm %s880_s0, %s470_s27  ;;  %s150_s3 = scalar_lea.vmem [#allocation2], %s455_s26 }
  0x15   : > { %s161_s4 = sshll.u32 %s150_s3, 4  ;;  %p782_p0 = pnand %p490_p13, %p749_p4  ;;  %s162_s4 = int_to_ptr.vmem [resolvable:$true] %s161_s4 }
  0x16   : > { %p461_p1 = scmp.ge.s32.totalorder %s688_s14, 1  ;;  %p188_p2 = scmp.lt.s32.totalorder %s688_s14, 3 }
  0x17   : > { %s147_s6 = scalar_lea.sflag [#allocation3], %s773_s25  ;;  %p550_p3 = pneg %p782_p0 }
  0x18   : > { %s561_s7 = scalar_lea.vmem %s162_s4, 512  ;;  %s690_s8 = smov [#allocation2]  }
  0x19   : > { %p562_p5 = scmp.ne.s32.totalorder %s162_s4, %s561_s7  ;;  %s566_s15 = sshll.u32 %s690_s8, 4  ;;  %s567_s15 = int_to_ptr.vmem [resolvable:$false] %s566_s15 }
  0x1a   : > { %s568_s16 = scalar_lea.vmem %s567_s15, 1024  ;;  %p569_p4 = scmp.lt.s32.totalorder %s162_s4, %s567_s15 }
  0x1b   : > { %p564_p6 = pnand %p562_p5, %p550_p3  ;;  %p570_p10 = scmp.lt.s32.totalorder %s568_s16, %s561_s7 }
  0x1d   : > { %p565_p7 = pneg %p564_p6  ;;  %p571_p13 = por %p570_p10, %p569_p4 }
  0x1f   : > { %p572_p12 = pnand %p571_p13, %p565_p7 }
  0x21   : > { %575 = shalt.err (!%p572_p12)
}
  0x22   : > { %482 = dma.hbm_to_vmem [thread:$0]  (!%p782_p0), %s159_s30, 512, %s162_s4, %s147_s6  }
  0x23   : > { %p800_p5 = pnand %p461_p1, %p188_p2  ;;  %s181_s28 = scalar_lea.hbm %s881_s1, %s470_s27 }
  0x24   : > { %s172_s29 = scalar_lea.vmem [#allocation5], %s455_s26  ;;  %s169_s7 = scalar_lea.sflag [#allocation6], %s773_s25 }
  0x25   : > { %s183_s3 = sshll.u32 %s172_s29, 4  ;;  %s691_s30 = smov [#allocation5]   ;;  %s184_s3 = int_to_ptr.vmem [resolvable:$true] %s183_s3 }
  0x26   : > { %s589_s8 = scalar_lea.vmem %s184_s3, 512  ;;  %s594_s4 = sshll.u32 %s691_s30, 4  ;;  %s595_s4 = int_to_ptr.vmem [resolvable:$false] %s594_s4 }
  0x27   : > { %p590_p12 = scmp.ne.s32.totalorder %s184_s3, %s589_s8  ;;  %s596_s6 = scalar_lea.vmem %s595_s4, 1024 }
  0x28   : > { %p597_p1 = scmp.lt.s32.totalorder %s184_s3, %s595_s4  ;;  %p598_p2 = scmp.lt.s32.totalorder %s596_s6, %s589_s8 }
  0x29   : > { %p592_p6 = pnand %p590_p12, %p550_p3 }
  0x2a   : > { %p599_p4 = por %p598_p2, %p597_p1 }
  0x2b   : > { %p593_p7 = pneg %p592_p6 }
  0x2d   : > { %p600_p10 = pnand %p599_p4, %p593_p7 }
  0x2f   : > { %603 = shalt.err (!%p600_p10)
}
  0x30   : > { %485 = dma.hbm_to_vmem [thread:$0]  (!%p782_p0), %s181_s28, 512, %s184_s3, %s169_s7  }
  0x31   : > { %192 = sbr.rel (%p800_p5) target bundleno = 103 (0x67), region = 28  ;;  %s816_s25 = sand.u32 (!%p800_p5), 1, %s672_s10  }
  0x32   : > { %s819_s26 = sshll.u32 (!%p800_p5), %s816_s25, 5  ;;  %s195_s27 = scalar_lea.sflag (!%p800_p5), [#allocation3], %s816_s25 }
  0x33   : > { %s198_s15 = scalar_lea.vmem (!%p800_p5), [#allocation2], %s819_s26 }
  0x36   : > { %655 = dma.done.wait (%p755_p8), %s195_s27, 512  }
  0x37   : > { %657 = vsyncadd (%p755_p8), %s195_s27, 4294966784  ;;  %s204_s5 = scalar_lea.sflag [#allocation6], %s816_s25  ;;  %s207_s16 = scalar_lea.vmem [#allocation5], %s819_s26 }
  0x38   : > { %659 = dma.done.wait (%p755_p8), %s204_s5, 512  }
  0x39   : > { %661 = vsyncadd (%p755_p8), %s204_s5, 4294966784  ;;  %v235_v0 = vld [vmem:[%s198_s15] sm:$0xff]  ;;  %v236_v2 = vld [vmem:[%s198_s15 + $0x8] sm:$0xff]  ;;  %s232_s21 = scalar_lea.vmem [#allocation7], %s819_s26  ;;  %s472_s19 = sshll.u32 %s680_s12, 9 }
  0x3a   : > { %v239_v1 = vld [vmem:[%s207_s16] sm:$0xff]  ;;  %v240_v5 = vld [vmem:[%s207_s16 + $0x8] sm:$0xff]  ;;  %v237_v6 = vld [vmem:[%s198_s15 + $0x10] sm:$0xff]  ;;  %s336_s18 = sshll.u32 %s232_s21, 4  ;;  %s334_s29 = scalar_lea.hbm %s882_s2, %s472_s19  ;;  %s835_s18 = int_to_ptr.vmem [resolvable:$true] %s336_s18 }
  0x3b   : > { %v243_v3 = vmul.f32 %v239_v1, %v235_v0  ;;  %v247_v4 = vadd.f32 %v239_v1, %v235_v0  ;;  %v241_v7 = vld [vmem:[%s207_s16 + $0x10] sm:$0xff]  ;;  %v244_v8 = vmul.f32 %v240_v5, %v236_v2  ;;  %v248_v9 = vadd.f32 %v240_v5, %v236_v2  ;;  %v238_v11 = vld [vmem:[%s198_s15 + $0x18] sm:$0xff]  ;;  %s320_s3 = scalar_lea.sflag [#allocation4], %s816_s25  ;;  %s604_s7 = scalar_lea.vmem %s835_s18, 512 }
  0x3c   : > { %v245_v10 = vmul.f32 %v241_v7, %v237_v6  ;;  %v242_v12 = vld [vmem:[%s207_s16 + $0x18] sm:$0xff]  ;;  %v249_v14 = vadd.f32 %v241_v7, %v237_v6  ;;  %v271_v28 = vmul.f32 0.5, %v239_v1  ;;  %v272_v29 = vmul.f32 0.5, %v240_v5  ;;  %p605_p8 = scmp.ne.s32.totalorder %s835_s18, %s604_s7  ;;  %s692_s12 = smov [#allocation7]  }
  0x3d   : > { %v251_v13 = vadd.f32 %v243_v3, %v243_v3  ;;  %v252_v15 = vadd.f32 %v244_v8, %v244_v8  ;;  %v246_v17 = vmul.f32 %v242_v12, %v238_v11  ;;  %v250_v19 = vadd.f32 %v242_v12, %v238_v11  ;;  %s608_s8 = sshll.u32 %s692_s12, 4  ;;  %s609_s8 = int_to_ptr.vmem [resolvable:$false] %s608_s8 }
  0x3e   : > { %v253_v16 = vadd.f32 %v245_v10, %v245_v10  ;;  %v273_v30 = vmul.f32 0.5, %v241_v7  ;;  %v275_v31 = vsub.f32 -0.25, %v271_v28  ;;  %v274_v32 = vmul.f32 0.5, %v242_v12  ;;  %p606_p0 = pnand %p605_p8, %p759_p9  ;;  %s610_s30 = scalar_lea.vmem %s609_s8, 1024 }
  0x3f   : > { %v255_v18 = vsub.f32 %v247_v4, %v251_v13  ;;  %v256_v20 = vsub.f32 %v248_v9, %v252_v15  ;;  %v254_v22 = vadd.f32 %v246_v17, %v246_v17  ;;  %v276_v34 = vsub.f32 -0.25, %v272_v29  ;;  %p611_p13 = scmp.lt.s32.totalorder %s835_s18, %s609_s8  ;;  %p612_p5 = scmp.lt.s32.totalorder %s610_s30, %s604_s7 }
  0x40   : > { %v257_v21 = vsub.f32 %v249_v14, %v253_v16  ;;  %v277_v38 = vsub.f32 -0.25, %v273_v30  ;;  %v278_v45 = vsub.f32 -0.25, %v274_v32  ;;  %p607_p3 = pneg %p606_p0 }
  0x41   : > { %v259_v23 = vsub.f32 1.0, %v255_v18  ;;  %v260_v24 = vsub.f32 1.0, %v256_v20  ;;  %v258_v26 = vsub.f32 %v250_v19, %v254_v22  ;;  %v279_v37 = vmul.f32 %v255_v18, %v255_v18  ;;  %p613_p12 = por %p612_p5, %p611_p13 }
  0x42   : > { %v261_v25 = vsub.f32 1.0, %v257_v21  ;;  %v280_v41 = vmul.f32 %v256_v20, %v256_v20  ;;  %v281_v44 = vmul.f32 %v257_v21, %v257_v21 }
  0x43   : > { %540 = vlog2.f32 %v259_v23  ;;  %v262_v27 = vsub.f32 1.0, %v258_v26  ;;  %v282_v51 = vmul.f32 %v258_v26, %v258_v26  ;;  %p614_p6 = pnand %p613_p12, %p607_p3 }
  0x44   : > { %542 = vlog2.f32 %v260_v24 }
  0x45   : > { %544 = vlog2.f32 %v261_v25 }
  0x46   : > { %546 = vlog2.f32 %v262_v27 }
  0x50   : > { %v541_v33 = vpop.eup %540 }
  0x51   : > { %v543_v35 = vpop.eup %542  ;;  %v264_v36 = vmul.f32 0.6931472, %v541_v33 }
  0x52   : > { %v545_v39 = vpop.eup %544  ;;  %v266_v40 = vmul.f32 0.6931472, %v543_v35 }
  0x53   : > { %v283_v42 = vmul.f32 %v275_v31, %v264_v36  ;;  %v268_v43 = vmul.f32 0.6931472, %v545_v39  ;;  %v547_v46 = vpop.eup %546 }
  0x54   : > { %v284_v47 = vmul.f32 %v276_v34, %v266_v40  ;;  %v270_v50 = vmul.f32 0.6931472, %v547_v46 }
  0x55   : > { %v287_v48 = vmul.f32 %v283_v42, %v279_v37  ;;  %v285_v49 = vmul.f32 %v277_v38, %v268_v43 }
  0x56   : > { %v288_v52 = vmul.f32 %v284_v47, %v280_v41  ;;  %v286_v54 = vmul.f32 %v278_v45, %v270_v50 }
  0x57   : > { %299 = vst [vmem:[%s232_s21] sm:$0xff] %v287_v48  ;;  %v289_v53 = vmul.f32 %v285_v49, %v281_v44 }
  0x58   : > { %300 = vst [vmem:[%s232_s21 + $0x8] sm:$0xff] %v288_v52  ;;  %v290_v55 = vmul.f32 %v286_v54, %v282_v51 }
  0x59   : > { %301 = vst [vmem:[%s232_s21 + $0x10] sm:$0xff] %v289_v53 }
  0x5a   : > { %302 = vst [vmem:[%s232_s21 + $0x18] sm:$0xff] %v290_v55 }
  0x5b   : > { %617 = shalt.err (!%p614_p6)
}
  0x5c   : > { %s618_s4 = scalar_lea.hbm %s334_s29, 512  ;;  %s622_s26 = scalar_lea.hbm %s882_s2, 1024 }
  0x5d   : > { %p619_p7 = scmp.ne.s32.totalorder %s334_s29, %s618_s4  ;;  %p623_p4 = scmp.lt.s32.totalorder %s334_s29, %s882_s2 }
  0x5e   : > { %p624_p10 = scmp.lt.s32.totalorder %s622_s26, %s618_s4 }
  0x5f   : > { %p620_p1 = pnand %p619_p7, %p759_p9 }
  0x60   : > { %p625_p8 = por %p624_p10, %p623_p4 }
  0x61   : > { %p621_p2 = pneg %p620_p1 }
  0x63   : > { %p626_p0 = pnand %p625_p8, %p621_p2 }
  0x65   : > { %629 = shalt.err (!%p626_p0)
}
  0x66   : > { %477 = dma.vmem_to_hbm [thread:$0]  (%p759_p9), %s835_s18, 512, %s334_s29, %s320_s3  }
  0x67 PF: > { %s348_s5 = sand.u32 1, %s668_s9   ;;  %p889_p3 = scmp.ge.s32.totalorder %s688_s14, 2 }
  0x68   : > { %s349_s16 = scalar_lea.sflag [#allocation4], %s348_s5 }
  0x69   : > { %p487_p13 = pnand %p889_p3, %p766_p11 }
  0x6b   : > { %p488_p5 = pneg %p487_p13 }
  0x6d   : > { %663 = dma.done.wait (%p488_p5), %s349_s16, 512  }
  0x6e   : > { %665 = vsyncadd (%p488_p5), %s349_s16, 4294966784  ;;  %s21_s14 = sadd.s32 1, %s688_s14   ;;  %s890_s9 = smov %s672_s10 }
  0x6f   : > { %p18_p12 = scmp.ge.s32.totalorder %s21_s14, 4   ;;  %s891_s10 = smov %s676_s11 }
  0x70   : > { %s892_s11 = smov %s764_s23  ;;  %s893_s12 = smov %s684_s13 }
  0x71   : > { %s894_s13 = smov %s896_s17  ;;  %20 = sbr.rel (!%p18_p12) target bundleno = 8 (0x8), region = 94 }
  0x76   :  { %354 = vsyncpa [#allocation3], 1 }
  0x77   :  { %356 = vsyncpa [#allocation3 + $0x1], 1 }
  0x78   :  { %357 = vsyncpa [#allocation6], 1 }
  0x79   :  { %359 = vsyncpa [#allocation6 + $0x1], 1 }
  0x7a   :  { %360 = vsyncpa [#allocation4], 1 }
  0x7b   :  { %362 = vsyncpa [#allocation4 + $0x1], 1 }

</bundles_post_ra>
